<compile_context>
chip_gen: v6e
topology: v6e:2x2x1
jax: 0.10.0
libtpu: 0.0.40
codegen_flags: <defaults>
</compile_context>

<pallas_src>
import functools
import numpy as np

import jax
import jax.numpy as jnp
from jax.experimental import pallas as pl
from jax.experimental.pallas import tpu as pltpu


NEG_INF = -1e30     # large finite negative: avoids NaN (inf-inf) for masked rows
EPS_NORM = 0.01     # padertorch Normalization eps used by TransformerLayer


# ----------------------------------------------------------------------------
# helpers
# ----------------------------------------------------------------------------
def _layer_norm(x, gamma, beta, eps=EPS_NORM):
    # statistics over channel axis (last), biased variance, affine
    mu = jnp.mean(x, axis=-1, keepdims=True)
    var = jnp.mean((x - mu) ** 2, axis=-1, keepdims=True)
    return gamma * (x - mu) * jax.lax.rsqrt(var + eps) + beta


def _nbytes(shape, dtype):
    return int(np.prod(shape)) * np.dtype(dtype).itemsize


def _vmem_cap():
    """Generation-aware usable VMEM budget."""
    cap = 128 << 20
    try:
        info = pltpu.get_tpu_info()
        for attr in ("vmem_capacity_bytes", "vmem_size_bytes", "vmem_bytes"):
            v = getattr(info, attr, None)
            if v:
                cap = int(v)
                break
    except Exception:
        pass
    # ~16 MiB headroom for Mosaic internal scratch; <=100 MiB on 128 MiB parts
    # (v5e/v6e), which yields ~48 MiB on v7x's 64 MiB physical VMEM.
    return int(min(cap - (16 << 20), 100 << 20))


def _vmem_limit(*block_bytes, scratch=0):
    # 2x for double buffering + slack, clamped to the per-generation budget.
    cap = _vmem_cap()
    est = 2 * int(sum(block_bytes)) + int(scratch) + (4 << 20)
    return int(min(cap, max(32 << 20, est)))


def _pick_tile(n, candidates):
    for c in candidates:
        if c <= n and n % c == 0:
            return c
    return n


_T_TILES = (512, 256, 128, 64, 32, 16, 8)
_TQ_TILES = (512, 256, 128, 64, 32, 16, 8)
_TK_TILES = (256, 128, 64, 32, 16, 8)
_F_TILES = (2048, 1024, 512, 256, 128)


# ----------------------------------------------------------------------------
# Kernel 1: input projection + positional encoding    h = x @ W_in + b + PE
# ----------------------------------------------------------------------------
def input_proj_kernel(x_ref, w_ref, b_ref, pe_ref, o_ref):
    x = x_ref[0].astype(jnp.bfloat16)                          # (bt, IN)
    h = jnp.dot(x, w_ref[...], preferred_element_type=jnp.float32)
    o_ref[0] = h + b_ref[...] + pe_ref[...]


def input_projection(x, w_bf16, b, pe, *, bt=None):
    B, T, IN = x.shape
    D = w_bf16.shape[1]
    bt = bt or _pick_tile(T, _T_TILES)
    vb = _vmem_limit(
        _nbytes((bt, IN), x.dtype), _nbytes(w_bf16.shape, w_bf16.dtype),
        _nbytes(b.shape, b.dtype), _nbytes((bt, D), pe.dtype),
        _nbytes((bt, D), jnp.float32))
    return pl.pallas_call(
        input_proj_kernel,
        out_shape=jax.ShapeDtypeStruct((B, T, D), jnp.float32),
        grid=(B, T // bt),
        in_specs=[
            pl.BlockSpec((1, bt, IN), lambda b_, t: (b_, t, 0)),
            pl.BlockSpec(w_bf16.shape, lambda b_, t: (0, 0)),
            pl.BlockSpec(b.shape, lambda b_, t: (0, 0)),
            pl.BlockSpec((bt, D), lambda b_, t: (t, 0)),
        ],
        out_specs=pl.BlockSpec((1, bt, D), lambda b_, t: (b_, t, 0)),
        compiler_params=pltpu.CompilerParams(
            dimension_semantics=("parallel", "parallel"),
            vmem_limit_bytes=vb),
    )(x, w_bf16, b, pe)


# ----------------------------------------------------------------------------
# Kernel 2: fused QKV projection, single stacked output (B, 3, H, T, dh)
#   (1/sqrt(dh) already folded into the q columns of W_qkv / b_qkv)
# ----------------------------------------------------------------------------
def qkv_proj_kernel(h_ref, w_ref, b_ref, qkv_ref, *, d_model, num_heads):
    dh = d_model // num_heads
    x = h_ref[0].astype(jnp.bfloat16)                          # (bt, D)
    qkv = jnp.dot(x, w_ref[...], preferred_element_type=jnp.float32) + b_ref[...]
    qkv = qkv.astype(jnp.bfloat16)                             # (bt, 3D)
    # Head relayout once per time tile (outside the attention kv loop).
    # Static slices/stores only: robust lowering, one output stream.
    for c in range(3):
        for hd in range(num_heads):
            lo = c * d_model + hd * dh
            qkv_ref[0, c, hd] = qkv[:, lo:lo + dh]


def qkv_projection(h, wqkv, bqkv, *, num_heads, bt=None):
    B, T, D = h.shape
    dh = D // num_heads
    bt = bt or _pick_tile(T, _T_TILES)
    vb = _vmem_limit(
        _nbytes((bt, D), jnp.float32), _nbytes(wqkv.shape, wqkv.dtype),
        _nbytes(bqkv.shape, bqkv.dtype),
        _nbytes((3, num_heads, bt, dh), jnp.bfloat16),
        scratch=_nbytes((bt, 3 * D), jnp.float32))
    return pl.pallas_call(
        functools.partial(qkv_proj_kernel, d_model=D, num_heads=num_heads),
        out_shape=jax.ShapeDtypeStruct((B, 3, num_heads, T, dh), jnp.bfloat16),
        grid=(B, T // bt),
        in_specs=[
            pl.BlockSpec((1, bt, D), lambda b_, t: (b_, t, 0)),
            pl.BlockSpec(wqkv.shape, lambda b_, t: (0, 0)),
            pl.BlockSpec(bqkv.shape, lambda b_, t: (0, 0)),
        ],
        out_specs=pl.BlockSpec((1, 3, num_heads, bt, dh),
                               lambda b_, t: (b_, 0, 0, t, 0)),
        compiler_params=pltpu.CompilerParams(
            dimension_semantics=("parallel", "parallel"),
            vmem_limit_bytes=vb),
    )(h, wqkv, bqkv)


# ----------------------------------------------------------------------------
# Kernel 3: causal multi-head flash attention (online softmax, heads batched)
#           fused with out-projection + layer norm + residual in the finalize
# ----------------------------------------------------------------------------
def flash_attn_kernel(q_ref, k_ref, v_ref, x_ref, wo_ref, bo_ref, g_ref, be_ref,
                      o_ref, m_sc, l_sc, acc_sc, *, tq, tk, num_heads, dh):
    qi = pl.program_id(1)
    ki = pl.program_id(2)

    @pl.when(ki == 0)
    def _():
        m_sc[...] = jnp.full_like(m_sc, NEG_INF)
        l_sc[...] = jnp.zeros_like(l_sc)
        acc_sc[...] = jnp.zeros_like(acc_sc)

    first_query = qi * tq
    last_query = first_query + tq - 1
    first_key = ki * tk
    last_key = first_key + tk - 1

    def accumulate(apply_mask):
        q = q_ref[0, 0]                                        # (H, tq, dh) bf16 (pre-scaled)
        k = k_ref[0, 0]                                        # (H, tk, dh) bf16
        v = v_ref[0, 0]                                        # (H, tk, dh) bf16
        s = jnp.einsum("hqd,hkd->hqk", q, k,
                       preferred_element_type=jnp.float32)     # (H, tq, tk)
        if apply_mask:
            row = first_query + jax.lax.broadcasted_iota(jnp.int32, (tq, tk), 0)
            col = first_key + jax.lax.broadcasted_iota(jnp.int32, (tq, tk), 1)
            s = jnp.where((col <= row)[None, :, :], s, NEG_INF)
        m_prev = m_sc[...]
        m_new = jnp.maximum(m_prev, s.max(axis=-1, keepdims=True))   # (H, tq, 1)
        alpha = jnp.exp(m_prev - m_new)
        p = jnp.exp(s - m_new)
        l_sc[...] = alpha * l_sc[...] + p.sum(axis=-1, keepdims=True)
        acc_sc[...] = alpha * acc_sc[...] + jnp.einsum(
            "hqk,hkd->hqd", p.astype(jnp.bfloat16), v,
            preferred_element_type=jnp.float32)
        m_sc[...] = m_new

    contributes = first_key <= last_query          # some key on/below the diagonal
    interior = last_key <= first_query             # fully unmasked tile

    @pl.when(contributes & interior)
    def _():
        accumulate(False)                          # no mask build / select

    @pl.when(contributes & jnp.logical_not(interior))
    def _():
        accumulate(True)                           # diagonal-crossing tile

    @pl.when(ki == pl.num_programs(2) - 1)
    def _():
        out = (acc_sc[...] * pl.reciprocal(l_sc[...], approx=True)
               ).astype(jnp.bfloat16)              # (H, tq, dh)
        # fused out-projection: sum_h out[h] @ wo[h]  (wo pre-reshaped (H,dh,D))
        h = jnp.dot(out[0], wo_ref[0], preferred_element_type=jnp.float32)
        for hd in range(1, num_heads):
            h = h + jnp.dot(out[hd], wo_ref[hd], preferred_element_type=jnp.float32)
        h = h + bo_ref[...]
        h = _layer_norm(h, g_ref[...], be_ref[...])
        o_ref[0] = (h + x_ref[0]).astype(o_ref.dtype)          # residual


def causal_attention_block(qkv, x, wo_h, bo, g, be, *, tq=None, tk=None):
    """qkv: (B, 3, H, T, dh) bf16; x: (B, T, D) residual; returns (B, T, D)."""
    B, _, H, T, dh = qkv.shape
    D = H * dh
    tq = tq or _pick_tile(T, _TQ_TILES)
    tk = tk or _pick_tile(T, _TK_TILES)
    assert T % tq == 0 and T % tk == 0
    nq, nk = T // tq, T // tk

    cost = pl.CostEstimate(
        flops=int(4 * B * H * T * T * dh + 2 * B * T * D * D),
        transcendentals=int(B * H * T * T),
        bytes_accessed=int(qkv.size * qkv.dtype.itemsize * 2 + 2 * B * T * D * 4))
    vb = _vmem_limit(
        _nbytes((H, tq, dh), jnp.bfloat16), 2 * _nbytes((H, tk, dh), jnp.bfloat16),
        _nbytes((tq, D), jnp.float32), _nbytes(wo_h.shape, wo_h.dtype),
        3 * _nbytes((1, D), jnp.float32), _nbytes((tq, D), jnp.float32),
        scratch=_nbytes((H, tq, dh), jnp.float32)
        + 2 * _nbytes((H, tq, 1), jnp.float32)
        + 3 * _nbytes((H, tq, tk), jnp.float32))   # score / prob temporaries

    # clamp the kv block index so fully-masked tiles reuse the resident block
    # (no extra DMA); the compute itself is gated with pl.when above.
    def kv_map(part):
        def f(b_, qi, ki):
            return (b_, part, 0, jnp.minimum(ki, (qi * tq + tq - 1) // tk), 0)
        return f

    return pl.pallas_call(
        functools.partial(flash_attn_kernel, tq=tq, tk=tk, num_heads=H, dh=dh),
        out_shape=jax.ShapeDtypeStruct((B, T, D), jnp.float32),
        grid=(B, nq, nk),
        in_specs=[
            pl.BlockSpec((1, 1, H, tq, dh), lambda b_, qi, ki: (b_, 0, 0, qi, 0)),
            pl.BlockSpec((1, 1, H, tk, dh), kv_map(1)),
            pl.BlockSpec((1, 1, H, tk, dh), kv_map(2)),
            pl.BlockSpec((1, tq, D), lambda b_, qi, ki: (b_, qi, 0)),   # residual
            pl.BlockSpec(wo_h.shape, lambda b_, qi, ki: (0, 0, 0)),
            pl.BlockSpec(bo.shape, lambda b_, qi, ki: (0, 0)),
            pl.BlockSpec(g.shape, lambda b_, qi, ki: (0, 0)),
            pl.BlockSpec(be.shape, lambda b_, qi, ki: (0, 0)),
        ],
        out_specs=pl.BlockSpec((1, tq, D), lambda b_, qi, ki: (b_, qi, 0)),
        scratch_shapes=[
            pltpu.VMEM((H, tq, 1), jnp.float32),               # running max
            pltpu.VMEM((H, tq, 1), jnp.float32),               # running sum
            pltpu.VMEM((H, tq, dh), jnp.float32),              # accumulator
        ],
        compiler_params=pltpu.CompilerParams(
            dimension_semantics=("parallel", "parallel", "arbitrary"),
            vmem_limit_bytes=vb),
        cost_estimate=cost,
    )(qkv, qkv, qkv, x, wo_h, bo, g, be)


# ----------------------------------------------------------------------------
# Kernel 4a: feed-forward with fully VMEM-resident weights (no d_ff axis)
# ----------------------------------------------------------------------------
def ffn_resident_kernel(h_ref, wh_ref, bh_ref, wout_ref, bout_ref, g_ref, be_ref,
                        o_ref):
    x = h_ref[0].astype(jnp.bfloat16)                          # (bt, D)
    hid = jnp.dot(x, wh_ref[...], preferred_element_type=jnp.float32) + bh_ref[...]
    hid = jnp.maximum(hid, 0.0).astype(jnp.bfloat16)           # relu, (bt, F)
    y = jnp.dot(hid, wout_ref[...], preferred_element_type=jnp.float32) + bout_ref[...]
    y = _layer_norm(y, g_ref[...], be_ref[...])
    o_ref[0] = y + h_ref[0]                                    # residual


# ----------------------------------------------------------------------------
# Kernel 4b: feed-forward (relu) tiled over d_ff + layer norm + residual
# ----------------------------------------------------------------------------
def ffn_tiled_kernel(h_ref, wh_ref, bh_ref, wout_ref, bout_ref, g_ref, be_ref,
                     o_ref, acc_ref):
    fi = pl.program_id(2)

    @pl.when(fi == 0)
    def _():
        acc_ref[...] = jnp.zeros_like(acc_ref)

    x = h_ref[0].astype(jnp.bfloat16)                          # (bt, D)
    hid = jnp.dot(x, wh_ref[...], preferred_element_type=jnp.float32) + bh_ref[...]
    hid = jnp.maximum(hid, 0.0).astype(jnp.bfloat16)           # relu, (bt, tf)
    acc_ref[...] += jnp.dot(hid, wout_ref[...], preferred_element_type=jnp.float32)

    @pl.when(fi == pl.num_programs(2) - 1)
    def _():
        y = acc_ref[...] + bout_ref[...]
        y = _layer_norm(y, g_ref[...], be_ref[...])
        o_ref[0] = y + h_ref[0]                                # residual


def feed_forward(h, wh, bh, wout, bout, g, be, *, bt=None, tf=None):
    B, T, D = h.shape
    F = wh.shape[1]
    bt = bt or _pick_tile(T, _T_TILES)
    cap = _vmem_cap()

    w_bytes = _nbytes(wh.shape, wh.dtype) + _nbytes(wout.shape, wout.dtype)
    resident_need = (2 * w_bytes
                     + 4 * _nbytes((bt, D), jnp.float32)
                     + 2 * _nbytes((bt, F), jnp.float32)
                     + (8 << 20))
    force_tiled = tf is not None and tf < F

    if resident_need <= cap and not force_tiled:
        # weights fully resident (O(1) weight HBM traffic per call)
        vb = int(min(cap, max(32 << 20, resident_need)))
        return pl.pallas_call(
            ffn_resident_kernel,
            out_shape=jax.ShapeDtypeStruct((B, T, D), jnp.float32),
            grid=(B, T // bt),
            in_specs=[
                pl.BlockSpec((1, bt, D), lambda b_, t: (b_, t, 0)),
                pl.BlockSpec(wh.shape, lambda b_, t: (0, 0)),
                pl.BlockSpec(bh.shape, lambda b_, t: (0, 0)),
                pl.BlockSpec(wout.shape, lambda b_, t: (0, 0)),
                pl.BlockSpec(bout.shape, lambda b_, t: (0, 0)),
                pl.BlockSpec(g.shape, lambda b_, t: (0, 0)),
                pl.BlockSpec(be.shape, lambda b_, t: (0, 0)),
            ],
            out_specs=pl.BlockSpec((1, bt, D), lambda b_, t: (b_, t, 0)),
            compiler_params=pltpu.CompilerParams(
                dimension_semantics=("parallel", "parallel"),
                vmem_limit_bytes=vb),
        )(h, wh, bh, wout, bout, g, be)

    # weights too large (e.g. v7x 64 MiB VMEM): stream them over a d_ff axis
    tf = tf or _pick_tile(F, _F_TILES)
    vb = _vmem_limit(
        _nbytes((bt, D), jnp.float32), _nbytes((D, tf), jnp.bfloat16),
        _nbytes((1, tf), jnp.float32), _nbytes((tf, D), jnp.bfloat16),
        3 * _nbytes((1, D), jnp.float32), _nbytes((bt, D), jnp.float32),
        scratch=_nbytes((bt, D), jnp.float32) + 2 * _nbytes((bt, tf), jnp.float32))
    return pl.pallas_call(
        ffn_tiled_kernel,
        out_shape=jax.ShapeDtypeStruct((B, T, D), jnp.float32),
        grid=(B, T // bt, F // tf),
        in_specs=[
            pl.BlockSpec((1, bt, D), lambda b_, t, f: (b_, t, 0)),
            pl.BlockSpec((D, tf), lambda b_, t, f: (0, f)),
            pl.BlockSpec((1, tf), lambda b_, t, f: (0, f)),
            pl.BlockSpec((tf, D), lambda b_, t, f: (f, 0)),
            pl.BlockSpec(bout.shape, lambda b_, t, f: (0, 0)),
            pl.BlockSpec(g.shape, lambda b_, t, f: (0, 0)),
            pl.BlockSpec(be.shape, lambda b_, t, f: (0, 0)),
        ],
        out_specs=pl.BlockSpec((1, bt, D), lambda b_, t, f: (b_, t, 0)),
        scratch_shapes=[pltpu.VMEM((bt, D), jnp.float32)],
        compiler_params=pltpu.CompilerParams(
            dimension_semantics=("parallel", "parallel", "arbitrary"),
            vmem_limit_bytes=vb),
    )(h, wh, bh, wout, bout, g, be)


# ----------------------------------------------------------------------------
# Layer / stack wrappers
# ----------------------------------------------------------------------------
def transformer_layer(h, p, *, num_heads, bt=None, tq=None, tk=None, tf=None):
    qkv = qkv_projection(h, p["wqkv"], p["bqkv"], num_heads=num_heads, bt=bt)
    h1 = causal_attention_block(qkv, h, p["wo_h"], p["bo"], p["g1"], p["be1"],
                                tq=tq, tk=tk)
    return feed_forward(h1, p["wh"], p["bh"], p["wout"], p["bout"],
                        p["g2"], p["be2"], bt=bt, tf=tf)


def transformer_layer_stack(x, prepared, *, num_heads, bt=None, tq=None, tk=None,
                            tf=None):
    """Forward pass of TransformerLayerStack (seq_len=None, state=None)."""
    h = input_projection(x, prepared["w_in"], prepared["b_in"], prepared["pe"], bt=bt)
    states = []
    for p in prepared["layers"]:
        states.append(h)                                       # s = x (state is None)
        h = transformer_layer(h, p, num_heads=num_heads, bt=bt, tq=tq, tk=tk, tf=tf)
    return h, states


# ----------------------------------------------------------------------------
# Parameter construction / preparation
# ----------------------------------------------------------------------------
def make_params(key, input_size, d_model, d_ff, num_layers):
    def lin(key, fan_in, fan_out):
        kw, kb = jax.random.split(key)
        bound = 1.0 / np.sqrt(fan_in)
        w = jax.random.uniform(kw, (fan_in, fan_out), jnp.float32, -bound, bound)
        b = jax.random.uniform(kb, (1, fan_out), jnp.float32, -bound, bound)
        return w, b

    keys = jax.random.split(key, 1 + num_layers)
    w_in, b_in = lin(keys[0], input_size, d_model)
    layers = []
    for i in range(num_layers):
        lk = jax.random.split(keys[1 + i], 6)
        wq, bq = lin(lk[0], d_model, d_model)
        wk, bk = lin(lk[1], d_model, d_model)
        wv, bv = lin(lk[2], d_model, d_model)
        wo, bo = lin(lk[3], d_model, d_model)
        wh, bh = lin(lk[4], d_model, d_ff)
        wout, bout = lin(lk[5], d_ff, d_model)
        layers.append(dict(
            wq=wq, bq=bq, wk=wk, bk=bk, wv=wv, bv=bv, wo=wo, bo=bo,
            g1=jnp.ones((1, d_model), jnp.float32),
            be1=jnp.zeros((1, d_model), jnp.float32),
            wh=wh, bh=bh, wout=wout, bout=bout,
            g2=jnp.ones((1, d_model), jnp.float32),
            be2=jnp.zeros((1, d_model), jnp.float32)))
    return (w_in, b_in), layers


def positional_encoding(T, D):
    positions = np.arange(T, dtype=np.float32)[:, None]
    dims = np.arange(D // 2, dtype=np.float32)
    inv = 10000.0 ** (2.0 * dims / D)
    pe = np.stack((np.cos(positions / inv), np.sin(positions / inv)), axis=-1)
    return jnp.asarray(pe.reshape(T, D), jnp.float32)          # interleaved cos/sin


def prepare_params(in_params, layer_params, *, num_heads, T):
    """Fuse Q/K/V weights, fold 1/sqrt(dh) into Q, reshape wo per head,
    cast matmul weights to bf16."""
    w_in, b_in = in_params
    d_model = w_in.shape[1]
    assert d_model % num_heads == 0
    dh = d_model // num_heads
    scale = 1.0 / np.sqrt(dh)
    layers = []
    for p in layer_params:
        wqkv = jnp.concatenate([p["wq"] * scale, p["wk"], p["wv"]], axis=1)
        bqkv = jnp.concatenate([p["bq"] * scale, p["bk"], p["bv"]], axis=1)
        layers.append(dict(
            wqkv=wqkv.astype(jnp.bfloat16), bqkv=bqkv,
            wo_h=p["wo"].reshape(num_heads, dh, d_model).astype(jnp.bfloat16),
            bo=p["bo"],
            g1=p["g1"], be1=p["be1"],
            wh=p["wh"].astype(jnp.bfloat16), bh=p["bh"],
            wout=p["wout"].astype(jnp.bfloat16), bout=p["bout"],
            g2=p["g2"], be2=p["be2"]))
    return dict(w_in=w_in.astype(jnp.bfloat16), b_in=b_in,
                pe=positional_encoding(T, d_model), layers=layers)


# ----------------------------------------------------------------------------
# Pure-JAX reference (mirrors the kernel's bf16 casts; plain softmax)
# ----------------------------------------------------------------------------
def _reference(x, prepared, *, num_heads):
    h = jnp.dot(x.astype(jnp.bfloat16), prepared["w_in"],
                preferred_element_type=jnp.float32) + prepared["b_in"] + prepared["pe"][None]
    B, T, D = h.shape
    dh = D // num_heads
    causal = jnp.asarray(np.arange(T)[None, :] <= np.arange(T)[:, None])
    for p in prepared["layers"]:
        qkv = jnp.einsum("btc,cd->btd", h.astype(jnp.bfloat16), p["wqkv"],
                         preferred_element_type=jnp.float32) + p["bqkv"]
        qkv = qkv.astype(jnp.bfloat16)
        q = qkv[..., :D].reshape(B, T, num_heads, dh)
        k = qkv[..., D:2 * D].reshape(B, T, num_heads, dh)
        v = qkv[..., 2 * D:].reshape(B, T, num_heads, dh)
        s = jnp.einsum("bqhd,bkhd->bhqk", q, k, preferred_element_type=jnp.float32)
        s = jnp.where(causal[None, None], s, NEG_INF)
        pr = jax.nn.softmax(s, axis=-1)
        att = jnp.einsum("bhqk,bkhd->bhqd", pr.astype(jnp.bfloat16), v,
                         preferred_element_type=jnp.float32).astype(jnp.bfloat16)
        a = jnp.einsum("bhqd,hdc->bqc", att, p["wo_h"],
                       preferred_element_type=jnp.float32) + p["bo"]
        h1 = _layer_norm(a, p["g1"], p["be1"]) + h
        hid = jnp.maximum(jnp.einsum("btc,cf->btf", h1.astype(jnp.bfloat16), p["wh"],
                                     preferred_element_type=jnp.float32) + p["bh"], 0.0)
        y = jnp.einsum("btf,fd->btd", hid.astype(jnp.bfloat16), p["wout"],
                       preferred_element_type=jnp.float32) + p["bout"]
        h = _layer_norm(y, p["g2"], p["be2"]) + h1
    return h


# ----------------------------------------------------------------------------
if __name__ == "__main__":
    B, T = 2, 16
    input_size = 16
    d_model = 32
    d_ff = 256
    num_heads = 4
    num_layers = 2
    # small tiles so the decoupled tq!=tk flash path (nk>1, crossing + interior
    # tiles) is exercised at these toy shapes
    bt, tq, tk = 8, 16, 8

    key = jax.random.PRNGKey(0)
    kx, kp = jax.random.split(key)
    x = jax.random.normal(kx, (B, T, input_size), jnp.float32)
    in_params, layer_params = make_params(kp, input_size, d_model, d_ff, num_layers)
    prepared = prepare_params(in_params, layer_params, num_heads=num_heads, T=T)

    ref = _reference(x, prepared, num_heads=num_heads)

    # resident-weight FFN path (default at these shapes)
    out, states = transformer_layer_stack(
        x, prepared, num_heads=num_heads, bt=bt, tq=tq, tk=tk)
    out = jax.block_until_ready(out)
    np.testing.assert_allclose(np.asarray(out), np.asarray(ref), rtol=5e-2, atol=5e-2)

    # d_ff-tiled FFN path (used when weights do not fit the VMEM budget)
    out2, _ = transformer_layer_stack(
        x, prepared, num_heads=num_heads, bt=bt, tq=tq, tk=tk, tf=128)
    out2 = jax.block_until_ready(out2)
    np.testing.assert_allclose(np.asarray(out2), np.asarray(ref), rtol=5e-2, atol=5e-2)

    assert out.shape == (B, T, d_model)
    assert len(states) == num_layers and states[0].shape == (B, T, d_model)
    print("KERNEL_OK")
</pallas_src>

<mosaic_0001>
module attributes {stable_mosaic.version = 11 : i64} {
  func.func @input_proj_kernel(%arg0: i32, %arg1: i32, %arg2: memref<1x8x16xf32, #tpu.memory_space<vmem>>, %arg3: memref<16x32xbf16, #tpu.memory_space<vmem>>, %arg4: memref<1x32xf32, #tpu.memory_space<vmem>>, %arg5: memref<8x32xf32, #tpu.memory_space<vmem>>, %arg6: memref<1x8x32xf32, #tpu.memory_space<vmem>>) attributes {dimension_semantics = [#tpu.dimension_semantics<parallel>, #tpu.dimension_semantics<parallel>], iteration_bounds = array<i64: 2, 2>, scalar_prefetch = 0 : i64, scratch_operands = 0 : i64, tpu.core_type = #tpu.core_type<tc>, window_params = [{transform_indices = @transform_0, window_bounds = array<i64: 1, 8, 16>}, {pipeline_mode = #tpu.pipeline_mode<synchronous>, transform_indices = @transform_1, window_bounds = array<i64: 16, 32>}, {pipeline_mode = #tpu.pipeline_mode<synchronous>, transform_indices = @transform_2, window_bounds = array<i64: 1, 32>}, {transform_indices = @transform_3, window_bounds = array<i64: 8, 32>}, {transform_indices = @transform_4, window_bounds = array<i64: 1, 8, 32>}]} {
    %c0 = arith.constant 0 : index
    %c0_0 = arith.constant 0 : index
    %c0_1 = arith.constant 0 : index
    %0 = vector.load %arg2[%c0, %c0_0, %c0_1] : memref<1x8x16xf32, #tpu.memory_space<vmem>>, vector<1x8x16xf32>
    %1 = vector.shape_cast %0 : vector<1x8x16xf32> to vector<8x16xf32>
    %2 = arith.truncf %1 : vector<8x16xf32> to vector<8x16xbf16>
    %c0_2 = arith.constant 0 : index
    %c0_3 = arith.constant 0 : index
    %3 = vector.load %arg3[%c0_2, %c0_3] : memref<16x32xbf16, #tpu.memory_space<vmem>>, vector<16x32xbf16>
    %cst = arith.constant dense<0.000000e+00> : vector<8x32xf32>
    %4 = tpu.matmul %2, %3, %cst {dimension_numbers = #tpu.dot_dimension_numbers<[1], [0], [0], [1], [0, 0, 1, 1], [], []>} : vector<8x16xbf16>, vector<16x32xbf16>, vector<8x32xf32> -> vector<8x32xf32>
    %c0_4 = arith.constant 0 : index
    %c0_5 = arith.constant 0 : index
    %5 = vector.load %arg4[%c0_4, %c0_5] : memref<1x32xf32, #tpu.memory_space<vmem>>, vector<1x32xf32>
    %6 = vector.broadcast %5 : vector<1x32xf32> to vector<8x32xf32>
    %7 = arith.addf %4, %6 : vector<8x32xf32>
    %c0_6 = arith.constant 0 : index
    %c0_7 = arith.constant 0 : index
    %8 = vector.load %arg5[%c0_6, %c0_7] : memref<8x32xf32, #tpu.memory_space<vmem>>, vector<8x32xf32>
    %9 = arith.addf %7, %8 : vector<8x32xf32>
    %c0_8 = arith.constant 0 : index
    %c0_9 = arith.constant 0 : index
    %c0_10 = arith.constant 0 : index
    %10 = vector.load %arg6[%c0_8, %c0_9, %c0_10] : memref<1x8x32xf32, #tpu.memory_space<vmem>>, vector<1x8x32xf32>
    %11 = vector.shape_cast %10 : vector<1x8x32xf32> to vector<8x32xf32>
    %12 = vector.shape_cast %9 : vector<8x32xf32> to vector<1x8x32xf32>
    tpu.vector_store %arg6[%c0_8, %c0_9, %c0_10], %12 {strides = array<i32>} : memref<1x8x32xf32, #tpu.memory_space<vmem>>, vector<1x8x32xf32>,
    return
  }
  func.func @transform_0(%arg0: i32, %arg1: i32) -> (i32, i32, i32) {
    %c0_i32 = arith.constant 0 : i32
    %c0_i32_0 = arith.constant 0 : i32
    return %arg0, %arg1, %c0_i32 : i32, i32, i32
  }
  func.func @transform_1(%arg0: i32, %arg1: i32) -> (i32, i32) {
    %c0_i32 = arith.constant 0 : i32
    %c0_i32_0 = arith.constant 0 : i32
    %c0_i32_1 = arith.constant 0 : i32
    return %c0_i32, %c0_i32_0 : i32, i32
  }
  func.func @transform_2(%arg0: i32, %arg1: i32) -> (i32, i32) {
    %c0_i32 = arith.constant 0 : i32
    %c0_i32_0 = arith.constant 0 : i32
    %c0_i32_1 = arith.constant 0 : i32
    return %c0_i32, %c0_i32_0 : i32, i32
  }
  func.func @transform_3(%arg0: i32, %arg1: i32) -> (i32, i32) {
    %c0_i32 = arith.constant 0 : i32
    %c0_i32_0 = arith.constant 0 : i32
    return %arg1, %c0_i32 : i32, i32
  }
  func.func @transform_4(%arg0: i32, %arg1: i32) -> (i32, i32, i32) {
    %c0_i32 = arith.constant 0 : i32
    %c0_i32_0 = arith.constant 0 : i32
    return %arg0, %arg1, %c0_i32 : i32, i32, i32
  }
}

</mosaic_0001>

<bundles_post_ra>
// kernel: tpu_custom_call.1
= control target key start
LH: loop header
LB: loop body
LE: loop exit
PB: predicated region body
PF: predicated region fallthrough
CT: control target
= control target key end

     0   :  { %s1159_s0 = inlined_call_operand.hbm [shape: f32[2,16,16], index: 0, kind: input, shape index: {}]   ;;  %s1160_s1 = inlined_call_operand.hbm [shape: bf16[16,32], index: 1, kind: input, shape index: {}]   ;;  %s1161_s2 = inlined_call_operand.vmem [shape: f32[1,32], index: 2, kind: input, shape index: {}]   ;;  %s1162_s3 = inlined_call_operand.hbm [shape: f32[16,32], index: 3, kind: input, shape index: {}]   ;;  %s1163_s4 = inlined_call_operand.hbm [shape: f32[2,16,32], index: 4, kind: output, shape index: {}]  }
   0x1   :  { %1172 = sst [smem:[#allocation18_spill]] %s1159_s0 }
   0x2   :  { %1173 = sst [smem:[#allocation19_spill]] %s1161_s2 }
   0x3   :  { %1174 = sst [smem:[#allocation20_spill]] %s1163_s4 }
   0x4   :  { %9 = vsyncpa [#allocation3], 0 }
   0x5   :  { %11 = vsyncpa [#allocation3 + $0x1], 0 }
   0x6   :  { %12 = vsyncpa [#allocation6], 0 }
   0x7   :  { %13 = vsyncpa [#allocation4], 0 }
   0x8   :  { %15 = vsyncpa [#allocation4 + $0x1], 0  ;;  %s876_s15 = smov 0   ;;  %s878_s16 = smov 0  }
   0x9   :  { %s880_s17 = smov 0   ;;  %s882_s18 = smov 0  }
   0xa   :  { %s884_s19 = smov 0   ;;  %s886_s20 = smov 0  }
   0xb   :  { %s888_s21 = smov 0   ;;  %s890_s22 = smov 0  }
   0xc   :  { %s892_s23 = smov 0   ;;  %s894_s24 = smov 0  }
   0xd   :  { %s896_s25 = smov 0  }
   0xe LB: > { %1175 = sst [smem:[#allocation13_spill]] %s825_s21  ;;  %s932_s26 = sadd.s32 4294967295, %s841_s25   ;;  %s841_s25 = sphi %s896_s25, %s21_s25   ;;  %s837_s24 = sphi %s894_s24, %s1200_s24   ;;  %s833_s23 = sphi %s892_s23, %s1208_s23   ;;  %s829_s22 = sphi %s890_s22, %s1198_s22   ;;  %s825_s21 = sphi %s888_s21, %s1207_s21   ;;  %s821_s20 = sphi %s886_s20, %s1206_s20   ;;  %s817_s19 = sphi %s884_s19, %s1205_s19   ;;  %s813_s18 = sphi %s882_s18, %s1204_s18   ;;  %s809_s17 = sphi %s880_s17, %s1203_s17   ;;  %s805_s16 = sphi %s878_s16, %s1202_s16   ;;  %s801_s15 = sphi %s876_s15, %s1201_s15  }
   0xf   : > { %1176 = sst [smem:[#allocation14_spill]] %s837_s24  ;;  %s478_s27 = sadd.s32 4294967294, %s841_s25  }
  0x10   : > { %s30_s28 = sadd.s32 1, %s833_s23  ;;  %s33_s29 = sadd.s32 1, %s837_s24 }
  0x11   : > { %p31_p0 = scmp.ge.s32.totalorder %s30_s28, 2  ;;  %s42_s30 = sadd.s32 1, %s821_s20 }
  0x12   : > { %p49_p1 = scmp.ne.s32.totalorder %s821_s20, %s817_s19  ;;  %p1169_p2 = scmp.eq.s32.totalorder %s841_s25, 0 }
  0x13   : > { %s1210_s28 = smov (%p31_p0, %s30_s28), 0  ;;  %s1212_s29 = smov (!%p31_p0, %s33_s29), %s837_s24 }
  0x14   : > { %1177 = sst [smem:[#allocation15_spill]] %s1210_s28  ;;  %s946_s5 = ssub.s32 %s833_s23, %s1210_s28 }
  0x15   : > { %p950_p3 = por %p1169_p2, %p49_p1  ;;  %p35_p4 = scmp.ge.s32.totalorder %s1212_s29, 2 }
  0x16   : > { %p55_p5 = scmp.ne.s32.totalorder %s817_s19, %s813_s18  ;;  %p149_p7 = scmp.eq.s32.totalorder %s932_s26, 3 }
  0x17   : > { %s1214_s29 = smov (%p35_p4, %s1212_s29), 0  ;;  %p155_p9 = scmp.eq.s32.totalorder %s478_s27, 3 }
  0x18   : > { %1179 = sst [smem:[#allocation16_spill]] %s1214_s29  ;;  %p960_p8 = por %p149_p7, %p49_p1 }
  0x19   : > { %s37_s8 = ssub.s32 %s837_s24, %s1214_s29  ;;  %p970_p10 = por %p155_p9, %p55_p5 }
  0x1a   : > { %s1180_s7 = scalar_select %p960_p8, 1, 0 }
  0x1b   : > { %s39_s9 = sor.u32 %s946_s5, %s37_s8  ;;  %p1170_p12 = scmp.lt.s32.totalorder %s841_s25, 4 }
  0x1c   : > { %1181 = sst [smem:[#allocation17_spill]] %s1180_s7  ;;  %p40_p11 = scmp.eq.s32.totalorder %s39_s9, 0 }
  0x1d   : > { %s1182_s10 = scalar_select %p970_p10, 1, 0 }
  0x1e   : > { %s191_s11 = sand.u32 1, %s841_s25   ;;  %s193_s13 = sand.u32 1, %s821_s20  }
  0x1f   : > { %s977_s12 = scalar_select %p40_p11, %s821_s20, %s42_s30  }
  0x20   : > { %s482_s14 = sshll.u32 %s193_s13, 3  ;;  %s483_s28 = sshll.u32 %s837_s24, 1 }
  0x21   : > { %s200_s4 = sadd.s32 %s833_s23, %s483_s28  ;;  %s195_s27 = scalar_lea.vmem [#allocation2], %s482_s14 }
  0x22   : > { %s484_s7 = sshll.u32 %s200_s4, 7  ;;  %s204_s29 = sshll.u32 %s195_s27, 4  ;;  %s205_s29 = int_to_ptr.vmem [resolvable:$true] %s204_s29 }
  0x23   : > { %s1183_s0 = sld [smem:[#allocation18_spill]]  ;;  %p989_p13 = pnand %p1170_p12, %p950_p3 }
  0x24   : > { %s993_s30 = scalar_lea.sflag [#allocation3], %s191_s11  ;;  %s644_s28 = scalar_lea.vmem %s205_s29, 128 }
  0x25   : > { %p633_p0 = pneg %p989_p13  ;;  %p645_p1 = scmp.ne.s32.totalorder %s205_s29, %s644_s28 }
  0x26   : > { %s843_s4 = smov [#allocation2]  }
  0x27   : > { %p647_p4 = pnand %p645_p1, %p633_p0  ;;  %s649_s13 = sshll.u32 %s843_s4, 4  ;;  %s650_s13 = int_to_ptr.vmem [resolvable:$false] %s649_s13 }
  0x28   : > { %s651_s2 = scalar_lea.vmem %s650_s13, 256  ;;  %p652_p9 = scmp.lt.s32.totalorder %s205_s29, %s650_s13 }
  0x29   : > { %s202_s8 = scalar_lea.hbm %s1183_s0, %s484_s7  ;;  %p648_p7 = pneg %p647_p4 }
  0x2a   : > { %p653_p11 = scmp.lt.s32.totalorder %s651_s2, %s644_s28 }
  0x2c   : > { %p654_p2 = por %p653_p11, %p652_p9 }
  0x2e   : > { %p655_p3 = pnand %p654_p2, %p648_p7 }
  0x30   : > { %658 = shalt.err (!%p655_p3)
}
  0x31   : > { %525 = dma.hbm_to_vmem [thread:$0]  (!%p989_p13), %s202_s8, 128, %s205_s29, %s993_s30  }
  0x32   : > { %p56_p0 = scmp.eq.s32.totalorder %s932_s26, 0  ;;  %p479_p1 = scmp.ge.s32.totalorder %s841_s25, 1 }
  0x33   : > { %p162_p4 = scmp.lt.s32.totalorder %s841_s25, 5  ;;  %s844_s6 = smov [#allocation5]  }
  0x34   : > { %p1008_p9 = por %p56_p0, %p55_p5  ;;  %s174_s7 = sshll.u32 %s844_s6, 4  ;;  %s175_s7 = int_to_ptr.vmem [resolvable:$true] %s174_s7 }
  0x35   : > { %p1012_p2 = pnand %p479_p1, %p162_p4  ;;  %s110_s14 = sadd.s32 1, %s809_s17 }
  0x36   : > { %s670_s27 = scalar_lea.vmem %s175_s7, 128  ;;  %p678_p4 = scmp.lt.s32.totalorder %s175_s7, %s175_s7 }
  0x37   : > { %p518_p7 = pneg %p1012_p2  ;;  %p671_p11 = scmp.ne.s32.totalorder %s175_s7, %s670_s27 }
  0x38   : > { %p679_p12 = scmp.lt.s32.totalorder %s670_s27, %s670_s27 }
  0x39   : > { %p1020_p13 = pnand %p518_p7, %p56_p0 }
  0x3a   : > { %p680_p6 = por %p679_p12, %p678_p4 }
  0x3b   : > { %p661_p5 = pneg %p1020_p13 }
  0x3d   : > { %p673_p3 = pnand %p671_p11, %p661_p5 }
  0x3f   : > { %p674_p1 = pneg %p673_p3 }
  0x41   : > { %p681_p10 = pnand %p680_p6, %p674_p1 }
  0x43   : > { %684 = shalt.err (!%p681_p10)
}
  0x44   : > { %s845_s8 = smov 64   ;;  %s846_s9 = smov 4  }
  0x45   : > { %521 = dma.hbm_to_vmem [thread:$0]  (!%p1020_p13), %s1160_s1, 128, %s175_s7, [#allocation6], %s845_s8, %s845_s8, %s846_s9  }
  0x46   : > { %p1188_p6 = scmp.eq.s32.totalorder %s946_s5, 0  ;;  %p117_p10 = scmp.ne.s32.totalorder %s809_s17, %s805_s16 }
  0x47   : > { %p123_p12 = scmp.ne.s32.totalorder %s805_s16, %s801_s15  ;;  %s213_s2 = sand.u32 1, %s809_s17  }
  0x48   : > { %s1035_s13 = scalar_select %p1188_p6, %s809_s17, %s110_s14  }
  0x49   : > { %s486_s6 = sshll.u32 %s833_s23, 7  ;;  %p1189_p7 = scmp.eq.s32.totalorder %s841_s25, 0 }
  0x4a   : > { %p1047_p11 = por %p123_p12, %p56_p0  ;;  %s485_s0 = sshll.u32 %s213_s2, 3 }
  0x4b   : > { %p119_p5 = por %p117_p10, %p1189_p7  ;;  %s220_s28 = scalar_lea.hbm %s1162_s3, %s486_s6 }
  0x4c   : > { %p1191_p13 = scmp.lt.s32.totalorder %s841_s25, 4  ;;  %s215_s15 = scalar_lea.vmem [#allocation7], %s485_s0 }
  0x4d   : > { %s222_s7 = sshll.u32 %s215_s15, 4  ;;  %s847_s8 = smov [#allocation7]   ;;  %s223_s7 = int_to_ptr.vmem [resolvable:$true] %s222_s7 }
  0x4e   : > { %p1056_p3 = pnand %p1191_p13, %p119_p5  ;;  %s698_s14 = scalar_lea.vmem %s223_s7, 128 }
  0x4f   : > { %p699_p4 = scmp.ne.s32.totalorder %s223_s7, %s698_s14  ;;  %s703_s9 = sshll.u32 %s847_s8, 4  ;;  %s704_s9 = int_to_ptr.vmem [resolvable:$false] %s703_s9 }
  0x50   : > { %p687_p1 = pneg %p1056_p3  ;;  %s705_s24 = scalar_lea.vmem %s704_s9, 256 }
  0x51   : > { %p706_p12 = scmp.lt.s32.totalorder %s223_s7, %s704_s9  ;;  %p707_p7 = scmp.lt.s32.totalorder %s705_s24, %s698_s14 }
  0x52   : > { %p701_p6 = pnand %p699_p4, %p687_p1 }
  0x53   : > { %p708_p5 = por %p707_p7, %p706_p12 }
  0x54   : > { %p702_p10 = pneg %p701_p6 }
  0x56   : > { %p709_p13 = pnand %p708_p5, %p702_p10 }
  0x58   : > { %712 = shalt.err (!%p709_p13)
}
  0x59   : > { %528 = dma.hbm_to_vmem [thread:$0]  (!%p1056_p3), %s220_s28, 128, %s223_s7, %s993_s30  }
  0x5a   : > { %231 = sbr.rel (%p1012_p2) target bundleno = 318 (0x13e), region = 36  ;;  %s233_s0 = sand.u32 (!%p1012_p2), 1, %s932_s26  }
  0x5b   : > { %s235_s4 = sand.u32 (!%p1012_p2), 1, %s817_s19   ;;  %s234_s6 = scalar_lea.sflag (!%p1012_p2), [#allocation3], %s233_s0 }
  0x5c   : > { %s1071_s2 = sshll.u32 (!%p1012_p2), %s235_s4, 3 }
  0x5d   : > { %s237_s29 = scalar_lea.vmem (!%p1012_p2), [#allocation2], %s1071_s2 }
  0x5f   : > { %784 = dma.done.wait (%p1008_p9), %s234_s6, 128  }
  0x60   : > { %786 = vsyncadd (%p1008_p9), %s234_s6, 4294967168 }
  0x61   : > { %788 = dma.done.wait (%p56_p0), [#allocation6], 128  }
  0x62   : > { %790 = vsyncadd (%p56_p0), [#allocation6], 4294967168  ;;  %s248_s30 = sand.u32 1, %s805_s16  }
  0x63   : > { %s490_s11 = sshll.u32 %s248_s30, 3 }
  0x64   : > { %s250_s28 = scalar_lea.vmem [#allocation7], %s490_s11 }
  0x65   : > { %792 = dma.done.wait (%p1047_p11), %s234_s6, 128  }
  0x66   : > { %794 = vsyncadd (%p1047_p11), %s234_s6, 4294967168  ;;  %s1193_s5 = sld [smem:[#allocation13_spill]]  ;;  %v848_v0 = vmov 0.0   ;;  %vm849_vm0 = vmmov 0   ;;  %v630_v1 = vld [vmem:[#allocation5] sm:$0xff]   ;;  %v281_v2 = vld [vmem:[%s237_s29] sm:$0xff] }
  0x67   : > { %502 = vmatprep.subr.bf16.mxu0 %v848_v0  ;;  %504 = vmatprep.mubr.msk.bf16.mxu0 %vm849_vm0, %v848_v0  ;;  %v282_v3 = vpack.c.bf16 %v281_v2, %v281_v2  ;;  %vm298_vm1 = vcmask 130048   ;;  %s496_s26 = sshll.u32 %s829_s22, 1  ;;  %s1194_s14 = sld [smem:[#allocation19_spill]]  ;;  %v342_v6 = vld [vmem:[%s250_s28] sm:$0xff]  ;;  %vm344_vm2 = vcmask 261120  }
  0x68   : > { %503 = vmatpush3.bf16.msra.mxu0 %v630_v1  ;;  %s279_s9 = scalar_lea.vmem [#allocation8], %s1071_s2  ;;  %s1196_s29 = sld [smem:[#allocation20_spill]] }
  0x69   : > { %s362_s24 = sshll.u32 %s279_s9, 4  ;;  %s347_s2 = scalar_lea.sflag [#allocation4], %s235_s4  ;;  %s1098_s24 = int_to_ptr.vmem [resolvable:$true] %s362_s24 }
  0x6a   : > { %s713_s30 = scalar_lea.vmem %s1098_s24, 128  ;;  %s850_s11 = smov [#allocation8]  }
  0x6b   : > { %505 = vmatmul.mubr.msk.bf16.vlgmr.msra.gmra.mxu0 %vm298_vm1, %v282_v3  ;;  %p714_p0 = scmp.ne.s32.totalorder %s1098_s24, %s713_s30  ;;  %s717_s28 = sshll.u32 %s850_s11, 4  ;;  %s718_s28 = int_to_ptr.vmem [resolvable:$false] %s717_s28 }
  0x6c   : > { %s358_s21 = sadd.s32 %s1193_s5, %s496_s26  ;;  %s719_s5 = scalar_lea.vmem %s718_s28, 256 }
  0x6d   : > { %v492_v4 = vld [vmem:[%s1194_s14] ss:$0 sm:$0xff]  ;;  %s497_s8 = sshll.u32 %s358_s21, 7  ;;  %p715_p9 = pnand %p714_p0, %p960_p8 }
  0x6e   : > { %s1096_s22 = scalar_lea.hbm %s1196_s29, %s497_s8  ;;  %p720_p11 = scmp.lt.s32.totalorder %s1098_s24, %s718_s28 }
  0x6f   : > { %p716_p2 = pneg %p715_p9  ;;  %p721_p3 = scmp.lt.s32.totalorder %s719_s5, %s713_s30 }
  0x71   : > { %p722_p1 = por %p721_p3, %p720_p11 }
  0x73   : > { %p723_p4 = pnand %p722_p1, %p716_p2 }
 0x12b   : > { %v336_v5 = vpop.f32.mrf.mxu0 }
 0x12c   : > { %v337_v7 = vadd.f32 %v492_v4, %v336_v5 }
 0x12d   : > { %v506_v8 = vpop.f32.mrf.mxu0 }
 0x12e   : > { %v343_v9 = vadd.f32 %v342_v6, %v337_v7 }
 0x12f   : > { %v339_v10 = vpop.f32.mrf.mxu0 }
 0x130   : > { %345 = vst.msk [vmem:[%s279_s9] sm:$0xff] %vm344_vm2, %v343_v9 }
 0x131   : > { %v507_v11 = vpop.f32.mrf.mxu0 }
 0x132   : > { %726 = shalt.err (!%p723_p4)
}
 0x133   : > { %s727_s26 = scalar_lea.hbm %s1096_s22, 128  ;;  %s731_s15 = scalar_lea.hbm %s1196_s29, 512 }
 0x134   : > { %p728_p6 = scmp.ne.s32.totalorder %s1096_s22, %s727_s26  ;;  %p732_p7 = scmp.lt.s32.totalorder %s1096_s22, %s1196_s29 }
 0x135   : > { %p733_p5 = scmp.lt.s32.totalorder %s731_s15, %s727_s26 }
 0x136   : > { %p729_p10 = pnand %p728_p6, %p960_p8 }
 0x137   : > { %p734_p13 = por %p733_p5, %p732_p7 }
 0x138   : > { %p730_p12 = pneg %p729_p10 }
 0x13a   : > { %p735_p0 = pnand %p734_p13, %p730_p12 }
 0x13c   : > { %738 = shalt.err (!%p735_p0)
}
 0x13d   : > { %516 = dma.vmem_to_hbm [thread:$0]  (%p960_p8), %s1098_s24, 128, %s1096_s22, %s347_s2  }
 0x13e PF: > { %p536_p9 = scmp.ge.s32.totalorder %s841_s25, 2  ;;  %s374_s8 = sand.u32 1, %s813_s18  }
 0x13f   : > { %p1197_p2 = scmp.ne.s32.totalorder %s1182_s10, 0  ;;  %s375_s9 = scalar_lea.sflag [#allocation4], %s374_s8 }
 0x141   : > { %p530_p11 = pnand %p536_p9, %p1197_p2 }
 0x143   : > { %p531_p3 = pneg %p530_p11 }
 0x145   : > { %796 = dma.done.wait (%p531_p3), %s375_s9, 128  }
 0x146   : > { %798 = vsyncadd (%p531_p3), %s375_s9, 4294967168  ;;  %s21_s25 = sadd.s32 1, %s841_s25   ;;  %s1198_s22 = sld [smem:[#allocation14_spill]] }
 0x147   : > { %p18_p1 = scmp.ge.s32.totalorder %s21_s25, 6   ;;  %s1199_s27 = sld [smem:[#allocation15_spill]] }
 0x148   : > { %s1200_s24 = sld [smem:[#allocation16_spill]]  ;;  %s1201_s15 = smov %s805_s16 }
 0x149   : > { %s1202_s16 = smov %s809_s17  ;;  %s1203_s17 = smov %s1035_s13 }
 0x14a   : > { %s1204_s18 = smov %s817_s19  ;;  %s1205_s19 = smov %s821_s20 }
 0x14b   : > { %s1206_s20 = smov %s977_s12  ;;  %s1207_s21 = smov %s833_s23 }
 0x14c   :  { %20 = sbr.rel (!%p18_p1) target bundleno = 14 (0xe), region = 96 }
 0x14d   : > { %s1208_s23 = smov %s1199_s27 }
 0x151   :  { %380 = vsyncpa [#allocation3], 1 }
 0x152   :  { %382 = vsyncpa [#allocation3 + $0x1], 1 }
 0x153   :  { %383 = vsyncpa [#allocation6], 1 }
 0x154   :  { %384 = vsyncpa [#allocation4], 1 }
 0x155   :  { %386 = vsyncpa [#allocation4 + $0x1], 1 }

</bundles_post_ra>
